<compile_context>
chip_gen: v5e
topology: v5e:2x2
jax: 0.10.0
libtpu: 0.0.40
codegen_flags: <defaults>
</compile_context>

<pallas_src>
import jax
import jax.numpy as jnp
from jax.experimental import pallas as pl
from jax.experimental.pallas import tpu as pltpu

IN_F, H1, H2, OUT_F = 8, 6, 4, 1
LANES = 128       # lane width
SUBLANES = 8      # sublanes per f32 vreg
CHUNK = SUBLANES  # rows processed per inner-loop step (one vreg per feature)


def mlp_kernel(w1_ref, b1_ref, w2_ref, b2_ref, w3_ref, b3_ref, x_ref, o_ref):
    """VPU-only MLP on one [IN_F, SUB_ROWS, 128] batch-on-(sublane,lane) block.

    Weights/biases live in SMEM in PyTorch [out, in] layout.  The inner loop
    walks the block 8 rows (one vreg) at a time so intermediates never spill.
    """
    sub_rows = x_ref.shape[1]          # static; multiple of 8 by construction
    n_chunks = sub_rows // CHUNK

    # Hoist all SMEM scalar reads out of the inner loop (87 scalars total).
    w1 = [[w1_ref[j, k] for k in range(IN_F)] for j in range(H1)]
    b1 = [b1_ref[j] for j in range(H1)]
    w2 = [[w2_ref[j, k] for k in range(H1)] for j in range(H2)]
    b2 = [b2_ref[j] for j in range(H2)]
    w3 = [w3_ref[0, k] for k in range(H2)]
    b3 = b3_ref[0]

    @pl.loop(0, n_chunks)
    def _(c):
        r = pl.multiple_of(c * CHUNK, CHUNK)
        # 8 feature planes, each a dense [8, 128] vreg tile.
        xk = [x_ref[k, pl.ds(r, CHUNK), :] for k in range(IN_F)]

        # fc1 + ReLU   (dropout1 == identity in eval mode)
        h1 = []
        for j in range(H1):
            acc = xk[0] * w1[j][0]
            for t in range(1, IN_F):
                acc = acc + xk[t] * w1[j][t]
            h1.append(jnp.maximum(acc + b1[j], 0.0))

        # fc2 + ReLU   (dropout2 == identity in eval mode)
        h2 = []
        for j in range(H2):
            acc = h1[0] * w2[j][0]
            for t in range(1, H1):
                acc = acc + h1[t] * w2[j][t]
            h2.append(jnp.maximum(acc + b2[j], 0.0))

        # fc3 + sigmoid.  sigmoid(z) = 0.5*tanh(0.5*z) + 0.5 -> tanh on EUP.
        acc = h2[0] * w3[0]
        for t in range(1, H2):
            acc = acc + h2[t] * w3[t]
        z = acc + b3
        o_ref[pl.ds(r, CHUNK), :] = (0.5 * jnp.tanh(0.5 * z) + 0.5).astype(o_ref.dtype)


def _cdiv(a, b):
    return (a + b - 1) // b


def _round_up(a, b):
    return _cdiv(a, b) * b


def mlp_forward(x, params, *, max_block_rows=512):
    """x: [N, 8] float32 -> [N, 1] float32 (eval-mode forward).

    max_block_rows=512 -> 65_536 batch elements / ~2.3 MiB HBM traffic per grid
    step (fits all of v5e/v6e/v7x VMEM comfortably when double-buffered).
    """
    w1, b1, w2, b2, w3, b3 = params
    n = x.shape[0]
    assert x.shape[1] == IN_F

    # Pad the batch to a multiple of 8*128 so the kernel always sees full
    # (8, 128) vreg tiles.  The pad branch is skipped when already aligned.
    n_pad = _round_up(n, SUBLANES * LANES)
    xp = x.astype(jnp.float32)
    if n_pad != n:
        xp = jnp.pad(xp, ((0, n_pad - n), (0, 0)))
    n_rows = n_pad // LANES

    # Batch-on-(sublane, lane) layout: [IN_F, n_rows, 128].
    # TODO(synk): this transpose is one extra HBM pass; callers that can keep
    # activations feature-major ([IN_F, n_rows, 128]) should skip it upstream.
    xt = xp.reshape(n_rows, LANES, IN_F).transpose(2, 0, 1)

    # Block-row selection: big blocks to amortize per-step overhead, but keep
    # >= 2 roughly equal steps for large batches so the "parallel" axis can
    # shard across the two v7x TensorCores.
    if n_rows <= max_block_rows:
        sub_rows = n_rows
    else:
        n_steps = _cdiv(n_rows, max_block_rows)
        sub_rows = min(max_block_rows, _round_up(_cdiv(n_rows, n_steps), SUBLANES))
    assert sub_rows % SUBLANES == 0
    grid = (_cdiv(n_rows, sub_rows),)

    smem = pl.BlockSpec(memory_space=pltpu.MemorySpace.SMEM)

    out2d = pl.pallas_call(
        mlp_kernel,
        out_shape=jax.ShapeDtypeStruct((n_rows, LANES), jnp.float32),
        grid=grid,
        in_specs=[smem, smem, smem, smem, smem, smem,
                  pl.BlockSpec((IN_F, sub_rows, LANES), lambda i: (0, i, 0))],
        out_specs=pl.BlockSpec((sub_rows, LANES), lambda i: (i, 0)),
        compiler_params=pltpu.CompilerParams(
            dimension_semantics=("parallel",)),
        cost_estimate=pl.CostEstimate(
            flops=2 * n_pad * (IN_F * H1 + H1 * H2 + H2 * OUT_F),
            transcendentals=n_pad,
            bytes_accessed=n_pad * (IN_F + OUT_F) * 4),
    )(w1, b1, w2, b2, w3, b3, xt)

    return out2d.reshape(-1)[:n].reshape(n, 1)


def init_params(key):
    """Deterministic init mimicking torch.nn.Linear default (uniform +-1/sqrt(fan_in)).

    Weights are stored in PyTorch layout [out_features, in_features]."""
    def linear(key, fan_in, fan_out):
        kw, kb = jax.random.split(key)
        bound = 1.0 / jnp.sqrt(fan_in)
        w = jax.random.uniform(kw, (fan_out, fan_in), jnp.float32, -bound, bound)
        b = jax.random.uniform(kb, (fan_out,), jnp.float32, -bound, bound)
        return w, b

    k1, k2, k3 = jax.random.split(key, 3)
    w1, b1 = linear(k1, IN_F, H1)
    w2, b2 = linear(k2, H1, H2)
    w3, b3 = linear(k3, H2, OUT_F)
    return (w1, b1, w2, b2, w3, b3)


if __name__ == "__main__":
    key = jax.random.PRNGKey(0)
    kx, kp = jax.random.split(key)

    batch = 37  # small, non-multiple-of-128 batch to exercise the padding path
    x = jax.random.normal(kx, (batch, IN_F), dtype=jnp.float32)
    params = init_params(kp)

    out = mlp_forward(x, params)
    out = jax.block_until_ready(out)

    # Reference check in plain JAX (PyTorch semantics: y = x @ W.T + b,
    # eval-mode dropout = identity).
    w1, b1, w2, b2, w3, b3 = params
    h = jnp.maximum(x @ w1.T + b1, 0.0)
    h = jnp.maximum(h @ w2.T + b2, 0.0)
    ref = jax.nn.sigmoid(h @ w3.T + b3)

    assert out.shape == (batch, 1)
    assert jnp.allclose(out, ref, atol=1e-5), "mismatch vs reference"

    print("KERNEL_OK")
</pallas_src>

<mosaic_0001>
module attributes {stable_mosaic.version = 11 : i64} {
  func.func @mlp_kernel(%arg0: i32, %arg1: memref<6x8xf32, #tpu.memory_space<smem>>, %arg2: memref<6xf32, #tpu.memory_space<smem>>, %arg3: memref<4x6xf32, #tpu.memory_space<smem>>, %arg4: memref<4xf32, #tpu.memory_space<smem>>, %arg5: memref<1x4xf32, #tpu.memory_space<smem>>, %arg6: memref<1xf32, #tpu.memory_space<smem>>, %arg7: memref<8x8x128xf32, #tpu.memory_space<vmem>>, %arg8: memref<8x128xf32, #tpu.memory_space<vmem>>) attributes {dimension_semantics = [#tpu.dimension_semantics<parallel>], iteration_bounds = array<i64: 1>, scalar_prefetch = 0 : i64, scratch_operands = 0 : i64, tpu.core_type = #tpu.core_type<tc>, window_params = [{transform_indices = @transform_0, window_bounds = array<i64: 6, 8>}, {transform_indices = @transform_1, window_bounds = array<i64: 6>}, {transform_indices = @transform_2, window_bounds = array<i64: 4, 6>}, {transform_indices = @transform_3, window_bounds = array<i64: 4>}, {transform_indices = @transform_4, window_bounds = array<i64: 1, 4>}, {transform_indices = @transform_5, window_bounds = array<i64: 1>}, {transform_indices = @transform_6, window_bounds = array<i64: 8, 8, 128>}, {transform_indices = @transform_7, window_bounds = array<i64: 8, 128>}]} {
    %c0 = arith.constant 0 : index
    %c0_0 = arith.constant 0 : index
    %0 = memref.load %arg1[%c0, %c0_0] : memref<6x8xf32, #tpu.memory_space<smem>>
    %c0_1 = arith.constant 0 : index
    %c1 = arith.constant 1 : index
    %1 = memref.load %arg1[%c0_1, %c1] : memref<6x8xf32, #tpu.memory_space<smem>>
    %c0_2 = arith.constant 0 : index
    %c2 = arith.constant 2 : index
    %2 = memref.load %arg1[%c0_2, %c2] : memref<6x8xf32, #tpu.memory_space<smem>>
    %c0_3 = arith.constant 0 : index
    %c3 = arith.constant 3 : index
    %3 = memref.load %arg1[%c0_3, %c3] : memref<6x8xf32, #tpu.memory_space<smem>>
    %c0_4 = arith.constant 0 : index
    %c4 = arith.constant 4 : index
    %4 = memref.load %arg1[%c0_4, %c4] : memref<6x8xf32, #tpu.memory_space<smem>>
    %c0_5 = arith.constant 0 : index
    %c5 = arith.constant 5 : index
    %5 = memref.load %arg1[%c0_5, %c5] : memref<6x8xf32, #tpu.memory_space<smem>>
    %c0_6 = arith.constant 0 : index
    %c6 = arith.constant 6 : index
    %6 = memref.load %arg1[%c0_6, %c6] : memref<6x8xf32, #tpu.memory_space<smem>>
    %c0_7 = arith.constant 0 : index
    %c7 = arith.constant 7 : index
    %7 = memref.load %arg1[%c0_7, %c7] : memref<6x8xf32, #tpu.memory_space<smem>>
    %c1_8 = arith.constant 1 : index
    %c0_9 = arith.constant 0 : index
    %8 = memref.load %arg1[%c1_8, %c0_9] : memref<6x8xf32, #tpu.memory_space<smem>>
    %c1_10 = arith.constant 1 : index
    %c1_11 = arith.constant 1 : index
    %9 = memref.load %arg1[%c1_10, %c1_11] : memref<6x8xf32, #tpu.memory_space<smem>>
    %c1_12 = arith.constant 1 : index
    %c2_13 = arith.constant 2 : index
    %10 = memref.load %arg1[%c1_12, %c2_13] : memref<6x8xf32, #tpu.memory_space<smem>>
    %c1_14 = arith.constant 1 : index
    %c3_15 = arith.constant 3 : index
    %11 = memref.load %arg1[%c1_14, %c3_15] : memref<6x8xf32, #tpu.memory_space<smem>>
    %c1_16 = arith.constant 1 : index
    %c4_17 = arith.constant 4 : index
    %12 = memref.load %arg1[%c1_16, %c4_17] : memref<6x8xf32, #tpu.memory_space<smem>>
    %c1_18 = arith.constant 1 : index
    %c5_19 = arith.constant 5 : index
    %13 = memref.load %arg1[%c1_18, %c5_19] : memref<6x8xf32, #tpu.memory_space<smem>>
    %c1_20 = arith.constant 1 : index
    %c6_21 = arith.constant 6 : index
    %14 = memref.load %arg1[%c1_20, %c6_21] : memref<6x8xf32, #tpu.memory_space<smem>>
    %c1_22 = arith.constant 1 : index
    %c7_23 = arith.constant 7 : index
    %15 = memref.load %arg1[%c1_22, %c7_23] : memref<6x8xf32, #tpu.memory_space<smem>>
    %c2_24 = arith.constant 2 : index
    %c0_25 = arith.constant 0 : index
    %16 = memref.load %arg1[%c2_24, %c0_25] : memref<6x8xf32, #tpu.memory_space<smem>>
    %c2_26 = arith.constant 2 : index
    %c1_27 = arith.constant 1 : index
    %17 = memref.load %arg1[%c2_26, %c1_27] : memref<6x8xf32, #tpu.memory_space<smem>>
    %c2_28 = arith.constant 2 : index
    %c2_29 = arith.constant 2 : index
    %18 = memref.load %arg1[%c2_28, %c2_29] : memref<6x8xf32, #tpu.memory_space<smem>>
    %c2_30 = arith.constant 2 : index
    %c3_31 = arith.constant 3 : index
    %19 = memref.load %arg1[%c2_30, %c3_31] : memref<6x8xf32, #tpu.memory_space<smem>>
    %c2_32 = arith.constant 2 : index
    %c4_33 = arith.constant 4 : index
    %20 = memref.load %arg1[%c2_32, %c4_33] : memref<6x8xf32, #tpu.memory_space<smem>>
    %c2_34 = arith.constant 2 : index
    %c5_35 = arith.constant 5 : index
    %21 = memref.load %arg1[%c2_34, %c5_35] : memref<6x8xf32, #tpu.memory_space<smem>>
    %c2_36 = arith.constant 2 : index
    %c6_37 = arith.constant 6 : index
    %22 = memref.load %arg1[%c2_36, %c6_37] : memref<6x8xf32, #tpu.memory_space<smem>>
    %c2_38 = arith.constant 2 : index
    %c7_39 = arith.constant 7 : index
    %23 = memref.load %arg1[%c2_38, %c7_39] : memref<6x8xf32, #tpu.memory_space<smem>>
    %c3_40 = arith.constant 3 : index
    %c0_41 = arith.constant 0 : index
    %24 = memref.load %arg1[%c3_40, %c0_41] : memref<6x8xf32, #tpu.memory_space<smem>>
    %c3_42 = arith.constant 3 : index
    %c1_43 = arith.constant 1 : index
    %25 = memref.load %arg1[%c3_42, %c1_43] : memref<6x8xf32, #tpu.memory_space<smem>>
    %c3_44 = arith.constant 3 : index
    %c2_45 = arith.constant 2 : index
    %26 = memref.load %arg1[%c3_44, %c2_45] : memref<6x8xf32, #tpu.memory_space<smem>>
    %c3_46 = arith.constant 3 : index
    %c3_47 = arith.constant 3 : index
    %27 = memref.load %arg1[%c3_46, %c3_47] : memref<6x8xf32, #tpu.memory_space<smem>>
    %c3_48 = arith.constant 3 : index
    %c4_49 = arith.constant 4 : index
    %28 = memref.load %arg1[%c3_48, %c4_49] : memref<6x8xf32, #tpu.memory_space<smem>>
    %c3_50 = arith.constant 3 : index
    %c5_51 = arith.constant 5 : index
    %29 = memref.load %arg1[%c3_50, %c5_51] : memref<6x8xf32, #tpu.memory_space<smem>>
    %c3_52 = arith.constant 3 : index
    %c6_53 = arith.constant 6 : index
    %30 = memref.load %arg1[%c3_52, %c6_53] : memref<6x8xf32, #tpu.memory_space<smem>>
    %c3_54 = arith.constant 3 : index
    %c7_55 = arith.constant 7 : index
    %31 = memref.load %arg1[%c3_54, %c7_55] : memref<6x8xf32, #tpu.memory_space<smem>>
    %c4_56 = arith.constant 4 : index
    %c0_57 = arith.constant 0 : index
    %32 = memref.load %arg1[%c4_56, %c0_57] : memref<6x8xf32, #tpu.memory_space<smem>>
    %c4_58 = arith.constant 4 : index
    %c1_59 = arith.constant 1 : index
    %33 = memref.load %arg1[%c4_58, %c1_59] : memref<6x8xf32, #tpu.memory_space<smem>>
    %c4_60 = arith.constant 4 : index
    %c2_61 = arith.constant 2 : index
    %34 = memref.load %arg1[%c4_60, %c2_61] : memref<6x8xf32, #tpu.memory_space<smem>>
    %c4_62 = arith.constant 4 : index
    %c3_63 = arith.constant 3 : index
    %35 = memref.load %arg1[%c4_62, %c3_63] : memref<6x8xf32, #tpu.memory_space<smem>>
    %c4_64 = arith.constant 4 : index
    %c4_65 = arith.constant 4 : index
    %36 = memref.load %arg1[%c4_64, %c4_65] : memref<6x8xf32, #tpu.memory_space<smem>>
    %c4_66 = arith.constant 4 : index
    %c5_67 = arith.constant 5 : index
    %37 = memref.load %arg1[%c4_66, %c5_67] : memref<6x8xf32, #tpu.memory_space<smem>>
    %c4_68 = arith.constant 4 : index
    %c6_69 = arith.constant 6 : index
    %38 = memref.load %arg1[%c4_68, %c6_69] : memref<6x8xf32, #tpu.memory_space<smem>>
    %c4_70 = arith.constant 4 : index
    %c7_71 = arith.constant 7 : index
    %39 = memref.load %arg1[%c4_70, %c7_71] : memref<6x8xf32, #tpu.memory_space<smem>>
    %c5_72 = arith.constant 5 : index
    %c0_73 = arith.constant 0 : index
    %40 = memref.load %arg1[%c5_72, %c0_73] : memref<6x8xf32, #tpu.memory_space<smem>>
    %c5_74 = arith.constant 5 : index
    %c1_75 = arith.constant 1 : index
    %41 = memref.load %arg1[%c5_74, %c1_75] : memref<6x8xf32, #tpu.memory_space<smem>>
    %c5_76 = arith.constant 5 : index
    %c2_77 = arith.constant 2 : index
    %42 = memref.load %arg1[%c5_76, %c2_77] : memref<6x8xf32, #tpu.memory_space<smem>>
    %c5_78 = arith.constant 5 : index
    %c3_79 = arith.constant 3 : index
    %43 = memref.load %arg1[%c5_78, %c3_79] : memref<6x8xf32, #tpu.memory_space<smem>>
    %c5_80 = arith.constant 5 : index
    %c4_81 = arith.constant 4 : index
    %44 = memref.load %arg1[%c5_80, %c4_81] : memref<6x8xf32, #tpu.memory_space<smem>>
    %c5_82 = arith.constant 5 : index
    %c5_83 = arith.constant 5 : index
    %45 = memref.load %arg1[%c5_82, %c5_83] : memref<6x8xf32, #tpu.memory_space<smem>>
    %c5_84 = arith.constant 5 : index
    %c6_85 = arith.constant 6 : index
    %46 = memref.load %arg1[%c5_84, %c6_85] : memref<6x8xf32, #tpu.memory_space<smem>>
    %c5_86 = arith.constant 5 : index
    %c7_87 = arith.constant 7 : index
    %47 = memref.load %arg1[%c5_86, %c7_87] : memref<6x8xf32, #tpu.memory_space<smem>>
    %c0_88 = arith.constant 0 : index
    %48 = memref.load %arg2[%c0_88] : memref<6xf32, #tpu.memory_space<smem>>
    %c1_89 = arith.constant 1 : index
    %49 = memref.load %arg2[%c1_89] : memref<6xf32, #tpu.memory_space<smem>>
    %c2_90 = arith.constant 2 : index
    %50 = memref.load %arg2[%c2_90] : memref<6xf32, #tpu.memory_space<smem>>
    %c3_91 = arith.constant 3 : index
    %51 = memref.load %arg2[%c3_91] : memref<6xf32, #tpu.memory_space<smem>>
    %c4_92 = arith.constant 4 : index
    %52 = memref.load %arg2[%c4_92] : memref<6xf32, #tpu.memory_space<smem>>
    %c5_93 = arith.constant 5 : index
    %53 = memref.load %arg2[%c5_93] : memref<6xf32, #tpu.memory_space<smem>>
    %c0_94 = arith.constant 0 : index
    %c0_95 = arith.constant 0 : index
    %54 = memref.load %arg3[%c0_94, %c0_95] : memref<4x6xf32, #tpu.memory_space<smem>>
    %c0_96 = arith.constant 0 : index
    %c1_97 = arith.constant 1 : index
    %55 = memref.load %arg3[%c0_96, %c1_97] : memref<4x6xf32, #tpu.memory_space<smem>>
    %c0_98 = arith.constant 0 : index
    %c2_99 = arith.constant 2 : index
    %56 = memref.load %arg3[%c0_98, %c2_99] : memref<4x6xf32, #tpu.memory_space<smem>>
    %c0_100 = arith.constant 0 : index
    %c3_101 = arith.constant 3 : index
    %57 = memref.load %arg3[%c0_100, %c3_101] : memref<4x6xf32, #tpu.memory_space<smem>>
    %c0_102 = arith.constant 0 : index
    %c4_103 = arith.constant 4 : index
    %58 = memref.load %arg3[%c0_102, %c4_103] : memref<4x6xf32, #tpu.memory_space<smem>>
    %c0_104 = arith.constant 0 : index
    %c5_105 = arith.constant 5 : index
    %59 = memref.load %arg3[%c0_104, %c5_105] : memref<4x6xf32, #tpu.memory_space<smem>>
    %c1_106 = arith.constant 1 : index
    %c0_107 = arith.constant 0 : index
    %60 = memref.load %arg3[%c1_106, %c0_107] : memref<4x6xf32, #tpu.memory_space<smem>>
    %c1_108 = arith.constant 1 : index
    %c1_109 = arith.constant 1 : index
    %61 = memref.load %arg3[%c1_108, %c1_109] : memref<4x6xf32, #tpu.memory_space<smem>>
    %c1_110 = arith.constant 1 : index
    %c2_111 = arith.constant 2 : index
    %62 = memref.load %arg3[%c1_110, %c2_111] : memref<4x6xf32, #tpu.memory_space<smem>>
    %c1_112 = arith.constant 1 : index
    %c3_113 = arith.constant 3 : index
    %63 = memref.load %arg3[%c1_112, %c3_113] : memref<4x6xf32, #tpu.memory_space<smem>>
    %c1_114 = arith.constant 1 : index
    %c4_115 = arith.constant 4 : index
    %64 = memref.load %arg3[%c1_114, %c4_115] : memref<4x6xf32, #tpu.memory_space<smem>>
    %c1_116 = arith.constant 1 : index
    %c5_117 = arith.constant 5 : index
    %65 = memref.load %arg3[%c1_116, %c5_117] : memref<4x6xf32, #tpu.memory_space<smem>>
    %c2_118 = arith.constant 2 : index
    %c0_119 = arith.constant 0 : index
    %66 = memref.load %arg3[%c2_118, %c0_119] : memref<4x6xf32, #tpu.memory_space<smem>>
    %c2_120 = arith.constant 2 : index
    %c1_121 = arith.constant 1 : index
    %67 = memref.load %arg3[%c2_120, %c1_121] : memref<4x6xf32, #tpu.memory_space<smem>>
    %c2_122 = arith.constant 2 : index
    %c2_123 = arith.constant 2 : index
    %68 = memref.load %arg3[%c2_122, %c2_123] : memref<4x6xf32, #tpu.memory_space<smem>>
    %c2_124 = arith.constant 2 : index
    %c3_125 = arith.constant 3 : index
    %69 = memref.load %arg3[%c2_124, %c3_125] : memref<4x6xf32, #tpu.memory_space<smem>>
    %c2_126 = arith.constant 2 : index
    %c4_127 = arith.constant 4 : index
    %70 = memref.load %arg3[%c2_126, %c4_127] : memref<4x6xf32, #tpu.memory_space<smem>>
    %c2_128 = arith.constant 2 : index
    %c5_129 = arith.constant 5 : index
    %71 = memref.load %arg3[%c2_128, %c5_129] : memref<4x6xf32, #tpu.memory_space<smem>>
    %c3_130 = arith.constant 3 : index
    %c0_131 = arith.constant 0 : index
    %72 = memref.load %arg3[%c3_130, %c0_131] : memref<4x6xf32, #tpu.memory_space<smem>>
    %c3_132 = arith.constant 3 : index
    %c1_133 = arith.constant 1 : index
    %73 = memref.load %arg3[%c3_132, %c1_133] : memref<4x6xf32, #tpu.memory_space<smem>>
    %c3_134 = arith.constant 3 : index
    %c2_135 = arith.constant 2 : index
    %74 = memref.load %arg3[%c3_134, %c2_135] : memref<4x6xf32, #tpu.memory_space<smem>>
    %c3_136 = arith.constant 3 : index
    %c3_137 = arith.constant 3 : index
    %75 = memref.load %arg3[%c3_136, %c3_137] : memref<4x6xf32, #tpu.memory_space<smem>>
    %c3_138 = arith.constant 3 : index
    %c4_139 = arith.constant 4 : index
    %76 = memref.load %arg3[%c3_138, %c4_139] : memref<4x6xf32, #tpu.memory_space<smem>>
    %c3_140 = arith.constant 3 : index
    %c5_141 = arith.constant 5 : index
    %77 = memref.load %arg3[%c3_140, %c5_141] : memref<4x6xf32, #tpu.memory_space<smem>>
    %c0_142 = arith.constant 0 : index
    %78 = memref.load %arg4[%c0_142] : memref<4xf32, #tpu.memory_space<smem>>
    %c1_143 = arith.constant 1 : index
    %79 = memref.load %arg4[%c1_143] : memref<4xf32, #tpu.memory_space<smem>>
    %c2_144 = arith.constant 2 : index
    %80 = memref.load %arg4[%c2_144] : memref<4xf32, #tpu.memory_space<smem>>
    %c3_145 = arith.constant 3 : index
    %81 = memref.load %arg4[%c3_145] : memref<4xf32, #tpu.memory_space<smem>>
    %c0_146 = arith.constant 0 : index
    %c0_147 = arith.constant 0 : index
    %82 = memref.load %arg5[%c0_146, %c0_147] : memref<1x4xf32, #tpu.memory_space<smem>>
    %c0_148 = arith.constant 0 : index
    %c1_149 = arith.constant 1 : index
    %83 = memref.load %arg5[%c0_148, %c1_149] : memref<1x4xf32, #tpu.memory_space<smem>>
    %c0_150 = arith.constant 0 : index
    %c2_151 = arith.constant 2 : index
    %84 = memref.load %arg5[%c0_150, %c2_151] : memref<1x4xf32, #tpu.memory_space<smem>>
    %c0_152 = arith.constant 0 : index
    %c3_153 = arith.constant 3 : index
    %85 = memref.load %arg5[%c0_152, %c3_153] : memref<1x4xf32, #tpu.memory_space<smem>>
    %c0_154 = arith.constant 0 : index
    %86 = memref.load %arg6[%c0_154] : memref<1xf32, #tpu.memory_space<smem>>
    %c0_i32 = arith.constant 0 : i32
    %c1_i32 = arith.constant 1 : i32
    %87 = arith.muli %c0_i32, %c1_i32 : i32
    %c0_i32_155 = arith.constant 0 : i32
    %88 = arith.addi %c0_i32_155, %87 : i32
    %c8_i32 = arith.constant 8 : i32
    %89 = arith.muli %88, %c8_i32 : i32
    %90 = tpu.assume_multiple %89, 8 : i32
    %c0_156 = arith.constant 0 : index
    %91 = arith.index_cast %90 : i32 to index
    %c0_157 = arith.constant 0 : index
    %92 = vector.load %arg7[%c0_156, %91, %c0_157] : memref<8x8x128xf32, #tpu.memory_space<vmem>>, vector<1x8x128xf32>
    %93 = vector.shape_cast %92 : vector<1x8x128xf32> to vector<8x128xf32>
    %c1_158 = arith.constant 1 : index
    %94 = arith.index_cast %90 : i32 to index
    %c0_159 = arith.constant 0 : index
    %95 = vector.load %arg7[%c1_158, %94, %c0_159] : memref<8x8x128xf32, #tpu.memory_space<vmem>>, vector<1x8x128xf32>
    %96 = vector.shape_cast %95 : vector<1x8x128xf32> to vector<8x128xf32>
    %c2_160 = arith.constant 2 : index
    %97 = arith.index_cast %90 : i32 to index
    %c0_161 = arith.constant 0 : index
    %98 = vector.load %arg7[%c2_160, %97, %c0_161] : memref<8x8x128xf32, #tpu.memory_space<vmem>>, vector<1x8x128xf32>
    %99 = vector.shape_cast %98 : vector<1x8x128xf32> to vector<8x128xf32>
    %c3_162 = arith.constant 3 : index
    %100 = arith.index_cast %90 : i32 to index
    %c0_163 = arith.constant 0 : index
    %101 = vector.load %arg7[%c3_162, %100, %c0_163] : memref<8x8x128xf32, #tpu.memory_space<vmem>>, vector<1x8x128xf32>
    %102 = vector.shape_cast %101 : vector<1x8x128xf32> to vector<8x128xf32>
    %c4_164 = arith.constant 4 : index
    %103 = arith.index_cast %90 : i32 to index
    %c0_165 = arith.constant 0 : index
    %104 = vector.load %arg7[%c4_164, %103, %c0_165] : memref<8x8x128xf32, #tpu.memory_space<vmem>>, vector<1x8x128xf32>
    %105 = vector.shape_cast %104 : vector<1x8x128xf32> to vector<8x128xf32>
    %c5_166 = arith.constant 5 : index
    %106 = arith.index_cast %90 : i32 to index
    %c0_167 = arith.constant 0 : index
    %107 = vector.load %arg7[%c5_166, %106, %c0_167] : memref<8x8x128xf32, #tpu.memory_space<vmem>>, vector<1x8x128xf32>
    %108 = vector.shape_cast %107 : vector<1x8x128xf32> to vector<8x128xf32>
    %c6_168 = arith.constant 6 : index
    %109 = arith.index_cast %90 : i32 to index
    %c0_169 = arith.constant 0 : index
    %110 = vector.load %arg7[%c6_168, %109, %c0_169] : memref<8x8x128xf32, #tpu.memory_space<vmem>>, vector<1x8x128xf32>
    %111 = vector.shape_cast %110 : vector<1x8x128xf32> to vector<8x128xf32>
    %c7_170 = arith.constant 7 : index
    %112 = arith.index_cast %90 : i32 to index
    %c0_171 = arith.constant 0 : index
    %113 = vector.load %arg7[%c7_170, %112, %c0_171] : memref<8x8x128xf32, #tpu.memory_space<vmem>>, vector<1x8x128xf32>
    %114 = vector.shape_cast %113 : vector<1x8x128xf32> to vector<8x128xf32>
    %115 = vector.broadcast %0 : f32 to vector<8x128xf32>
    %116 = arith.mulf %93, %115 : vector<8x128xf32>
    %117 = vector.broadcast %1 : f32 to vector<8x128xf32>
    %118 = arith.mulf %96, %117 : vector<8x128xf32>
    %119 = arith.addf %116, %118 : vector<8x128xf32>
    %120 = vector.broadcast %2 : f32 to vector<8x128xf32>
    %121 = arith.mulf %99, %120 : vector<8x128xf32>
    %122 = arith.addf %119, %121 : vector<8x128xf32>
    %123 = vector.broadcast %3 : f32 to vector<8x128xf32>
    %124 = arith.mulf %102, %123 : vector<8x128xf32>
    %125 = arith.addf %122, %124 : vector<8x128xf32>
    %126 = vector.broadcast %4 : f32 to vector<8x128xf32>
    %127 = arith.mulf %105, %126 : vector<8x128xf32>
    %128 = arith.addf %125, %127 : vector<8x128xf32>
    %129 = vector.broadcast %5 : f32 to vector<8x128xf32>
    %130 = arith.mulf %108, %129 : vector<8x128xf32>
    %131 = arith.addf %128, %130 : vector<8x128xf32>
    %132 = vector.broadcast %6 : f32 to vector<8x128xf32>
    %133 = arith.mulf %111, %132 : vector<8x128xf32>
    %134 = arith.addf %131, %133 : vector<8x128xf32>
    %135 = vector.broadcast %7 : f32 to vector<8x128xf32>
    %136 = arith.mulf %114, %135 : vector<8x128xf32>
    %137 = arith.addf %134, %136 : vector<8x128xf32>
    %138 = vector.broadcast %48 : f32 to vector<8x128xf32>
    %139 = arith.addf %137, %138 : vector<8x128xf32>
    %cst = arith.constant 0.000000e+00 : f32
    %140 = vector.broadcast %cst : f32 to vector<8x128xf32>
    %141 = arith.maximumf %139, %140 : vector<8x128xf32>
    %142 = vector.broadcast %8 : f32 to vector<8x128xf32>
    %143 = arith.mulf %93, %142 : vector<8x128xf32>
    %144 = vector.broadcast %9 : f32 to vector<8x128xf32>
    %145 = arith.mulf %96, %144 : vector<8x128xf32>
    %146 = arith.addf %143, %145 : vector<8x128xf32>
    %147 = vector.broadcast %10 : f32 to vector<8x128xf32>
    %148 = arith.mulf %99, %147 : vector<8x128xf32>
    %149 = arith.addf %146, %148 : vector<8x128xf32>
    %150 = vector.broadcast %11 : f32 to vector<8x128xf32>
    %151 = arith.mulf %102, %150 : vector<8x128xf32>
    %152 = arith.addf %149, %151 : vector<8x128xf32>
    %153 = vector.broadcast %12 : f32 to vector<8x128xf32>
    %154 = arith.mulf %105, %153 : vector<8x128xf32>
    %155 = arith.addf %152, %154 : vector<8x128xf32>
    %156 = vector.broadcast %13 : f32 to vector<8x128xf32>
    %157 = arith.mulf %108, %156 : vector<8x128xf32>
    %158 = arith.addf %155, %157 : vector<8x128xf32>
    %159 = vector.broadcast %14 : f32 to vector<8x128xf32>
    %160 = arith.mulf %111, %159 : vector<8x128xf32>
    %161 = arith.addf %158, %160 : vector<8x128xf32>
    %162 = vector.broadcast %15 : f32 to vector<8x128xf32>
    %163 = arith.mulf %114, %162 : vector<8x128xf32>
    %164 = arith.addf %161, %163 : vector<8x128xf32>
    %165 = vector.broadcast %49 : f32 to vector<8x128xf32>
    %166 = arith.addf %164, %165 : vector<8x128xf32>
    %cst_172 = arith.constant 0.000000e+00 : f32
    %167 = vector.broadcast %cst_172 : f32 to vector<8x128xf32>
    %168 = arith.maximumf %166, %167 : vector<8x128xf32>
    %169 = vector.broadcast %16 : f32 to vector<8x128xf32>
    %170 = arith.mulf %93, %169 : vector<8x128xf32>
    %171 = vector.broadcast %17 : f32 to vector<8x128xf32>
    %172 = arith.mulf %96, %171 : vector<8x128xf32>
    %173 = arith.addf %170, %172 : vector<8x128xf32>
    %174 = vector.broadcast %18 : f32 to vector<8x128xf32>
    %175 = arith.mulf %99, %174 : vector<8x128xf32>
    %176 = arith.addf %173, %175 : vector<8x128xf32>
    %177 = vector.broadcast %19 : f32 to vector<8x128xf32>
    %178 = arith.mulf %102, %177 : vector<8x128xf32>
    %179 = arith.addf %176, %178 : vector<8x128xf32>
    %180 = vector.broadcast %20 : f32 to vector<8x128xf32>
    %181 = arith.mulf %105, %180 : vector<8x128xf32>
    %182 = arith.addf %179, %181 : vector<8x128xf32>
    %183 = vector.broadcast %21 : f32 to vector<8x128xf32>
    %184 = arith.mulf %108, %183 : vector<8x128xf32>
    %185 = arith.addf %182, %184 : vector<8x128xf32>
    %186 = vector.broadcast %22 : f32 to vector<8x128xf32>
    %187 = arith.mulf %111, %186 : vector<8x128xf32>
    %188 = arith.addf %185, %187 : vector<8x128xf32>
    %189 = vector.broadcast %23 : f32 to vector<8x128xf32>
    %190 = arith.mulf %114, %189 : vector<8x128xf32>
    %191 = arith.addf %188, %190 : vector<8x128xf32>
    %192 = vector.broadcast %50 : f32 to vector<8x128xf32>
    %193 = arith.addf %191, %192 : vector<8x128xf32>
    %cst_173 = arith.constant 0.000000e+00 : f32
    %194 = vector.broadcast %cst_173 : f32 to vector<8x128xf32>
    %195 = arith.maximumf %193, %194 : vector<8x128xf32>
    %196 = vector.broadcast %24 : f32 to vector<8x128xf32>
    %197 = arith.mulf %93, %196 : vector<8x128xf32>
    %198 = vector.broadcast %25 : f32 to vector<8x128xf32>
    %199 = arith.mulf %96, %198 : vector<8x128xf32>
    %200 = arith.addf %197, %199 : vector<8x128xf32>
    %201 = vector.broadcast %26 : f32 to vector<8x128xf32>
    %202 = arith.mulf %99, %201 : vector<8x128xf32>
    %203 = arith.addf %200, %202 : vector<8x128xf32>
    %204 = vector.broadcast %27 : f32 to vector<8x128xf32>
    %205 = arith.mulf %102, %204 : vector<8x128xf32>
    %206 = arith.addf %203, %205 : vector<8x128xf32>
    %207 = vector.broadcast %28 : f32 to vector<8x128xf32>
    %208 = arith.mulf %105, %207 : vector<8x128xf32>
    %209 = arith.addf %206, %208 : vector<8x128xf32>
    %210 = vector.broadcast %29 : f32 to vector<8x128xf32>
    %211 = arith.mulf %108, %210 : vector<8x128xf32>
    %212 = arith.addf %209, %211 : vector<8x128xf32>
    %213 = vector.broadcast %30 : f32 to vector<8x128xf32>
    %214 = arith.mulf %111, %213 : vector<8x128xf32>
    %215 = arith.addf %212, %214 : vector<8x128xf32>
    %216 = vector.broadcast %31 : f32 to vector<8x128xf32>
    %217 = arith.mulf %114, %216 : vector<8x128xf32>
    %218 = arith.addf %215, %217 : vector<8x128xf32>
    %219 = vector.broadcast %51 : f32 to vector<8x128xf32>
    %220 = arith.addf %218, %219 : vector<8x128xf32>
    %cst_174 = arith.constant 0.000000e+00 : f32
    %221 = vector.broadcast %cst_174 : f32 to vector<8x128xf32>
    %222 = arith.maximumf %220, %221 : vector<8x128xf32>
    %223 = vector.broadcast %32 : f32 to vector<8x128xf32>
    %224 = arith.mulf %93, %223 : vector<8x128xf32>
    %225 = vector.broadcast %33 : f32 to vector<8x128xf32>
    %226 = arith.mulf %96, %225 : vector<8x128xf32>
    %227 = arith.addf %224, %226 : vector<8x128xf32>
    %228 = vector.broadcast %34 : f32 to vector<8x128xf32>
    %229 = arith.mulf %99, %228 : vector<8x128xf32>
    %230 = arith.addf %227, %229 : vector<8x128xf32>
    %231 = vector.broadcast %35 : f32 to vector<8x128xf32>
    %232 = arith.mulf %102, %231 : vector<8x128xf32>
    %233 = arith.addf %230, %232 : vector<8x128xf32>
    %234 = vector.broadcast %36 : f32 to vector<8x128xf32>
    %235 = arith.mulf %105, %234 : vector<8x128xf32>
    %236 = arith.addf %233, %235 : vector<8x128xf32>
    %237 = vector.broadcast %37 : f32 to vector<8x128xf32>
    %238 = arith.mulf %108, %237 : vector<8x128xf32>
    %239 = arith.addf %236, %238 : vector<8x128xf32>
    %240 = vector.broadcast %38 : f32 to vector<8x128xf32>
    %241 = arith.mulf %111, %240 : vector<8x128xf32>
    %242 = arith.addf %239, %241 : vector<8x128xf32>
    %243 = vector.broadcast %39 : f32 to vector<8x128xf32>
    %244 = arith.mulf %114, %243 : vector<8x128xf32>
    %245 = arith.addf %242, %244 : vector<8x128xf32>
    %246 = vector.broadcast %52 : f32 to vector<8x128xf32>
    %247 = arith.addf %245, %246 : vector<8x128xf32>
    %cst_175 = arith.constant 0.000000e+00 : f32
    %248 = vector.broadcast %cst_175 : f32 to vector<8x128xf32>
    %249 = arith.maximumf %247, %248 : vector<8x128xf32>
    %250 = vector.broadcast %40 : f32 to vector<8x128xf32>
    %251 = arith.mulf %93, %250 : vector<8x128xf32>
    %252 = vector.broadcast %41 : f32 to vector<8x128xf32>
    %253 = arith.mulf %96, %252 : vector<8x128xf32>
    %254 = arith.addf %251, %253 : vector<8x128xf32>
    %255 = vector.broadcast %42 : f32 to vector<8x128xf32>
    %256 = arith.mulf %99, %255 : vector<8x128xf32>
    %257 = arith.addf %254, %256 : vector<8x128xf32>
    %258 = vector.broadcast %43 : f32 to vector<8x128xf32>
    %259 = arith.mulf %102, %258 : vector<8x128xf32>
    %260 = arith.addf %257, %259 : vector<8x128xf32>
    %261 = vector.broadcast %44 : f32 to vector<8x128xf32>
    %262 = arith.mulf %105, %261 : vector<8x128xf32>
    %263 = arith.addf %260, %262 : vector<8x128xf32>
    %264 = vector.broadcast %45 : f32 to vector<8x128xf32>
    %265 = arith.mulf %108, %264 : vector<8x128xf32>
    %266 = arith.addf %263, %265 : vector<8x128xf32>
    %267 = vector.broadcast %46 : f32 to vector<8x128xf32>
    %268 = arith.mulf %111, %267 : vector<8x128xf32>
    %269 = arith.addf %266, %268 : vector<8x128xf32>
    %270 = vector.broadcast %47 : f32 to vector<8x128xf32>
    %271 = arith.mulf %114, %270 : vector<8x128xf32>
    %272 = arith.addf %269, %271 : vector<8x128xf32>
    %273 = vector.broadcast %53 : f32 to vector<8x128xf32>
    %274 = arith.addf %272, %273 : vector<8x128xf32>
    %cst_176 = arith.constant 0.000000e+00 : f32
    %275 = vector.broadcast %cst_176 : f32 to vector<8x128xf32>
    %276 = arith.maximumf %274, %275 : vector<8x128xf32>
    %277 = vector.broadcast %54 : f32 to vector<8x128xf32>
    %278 = arith.mulf %141, %277 : vector<8x128xf32>
    %279 = vector.broadcast %55 : f32 to vector<8x128xf32>
    %280 = arith.mulf %168, %279 : vector<8x128xf32>
    %281 = arith.addf %278, %280 : vector<8x128xf32>
    %282 = vector.broadcast %56 : f32 to vector<8x128xf32>
    %283 = arith.mulf %195, %282 : vector<8x128xf32>
    %284 = arith.addf %281, %283 : vector<8x128xf32>
    %285 = vector.broadcast %57 : f32 to vector<8x128xf32>
    %286 = arith.mulf %222, %285 : vector<8x128xf32>
    %287 = arith.addf %284, %286 : vector<8x128xf32>
    %288 = vector.broadcast %58 : f32 to vector<8x128xf32>
    %289 = arith.mulf %249, %288 : vector<8x128xf32>
    %290 = arith.addf %287, %289 : vector<8x128xf32>
    %291 = vector.broadcast %59 : f32 to vector<8x128xf32>
    %292 = arith.mulf %276, %291 : vector<8x128xf32>
    %293 = arith.addf %290, %292 : vector<8x128xf32>
    %294 = vector.broadcast %78 : f32 to vector<8x128xf32>
    %295 = arith.addf %293, %294 : vector<8x128xf32>
    %cst_177 = arith.constant 0.000000e+00 : f32
    %296 = vector.broadcast %cst_177 : f32 to vector<8x128xf32>
    %297 = arith.maximumf %295, %296 : vector<8x128xf32>
    %298 = vector.broadcast %60 : f32 to vector<8x128xf32>
    %299 = arith.mulf %141, %298 : vector<8x128xf32>
    %300 = vector.broadcast %61 : f32 to vector<8x128xf32>
    %301 = arith.mulf %168, %300 : vector<8x128xf32>
    %302 = arith.addf %299, %301 : vector<8x128xf32>
    %303 = vector.broadcast %62 : f32 to vector<8x128xf32>
    %304 = arith.mulf %195, %303 : vector<8x128xf32>
    %305 = arith.addf %302, %304 : vector<8x128xf32>
    %306 = vector.broadcast %63 : f32 to vector<8x128xf32>
    %307 = arith.mulf %222, %306 : vector<8x128xf32>
    %308 = arith.addf %305, %307 : vector<8x128xf32>
    %309 = vector.broadcast %64 : f32 to vector<8x128xf32>
    %310 = arith.mulf %249, %309 : vector<8x128xf32>
    %311 = arith.addf %308, %310 : vector<8x128xf32>
    %312 = vector.broadcast %65 : f32 to vector<8x128xf32>
    %313 = arith.mulf %276, %312 : vector<8x128xf32>
    %314 = arith.addf %311, %313 : vector<8x128xf32>
    %315 = vector.broadcast %79 : f32 to vector<8x128xf32>
    %316 = arith.addf %314, %315 : vector<8x128xf32>
    %cst_178 = arith.constant 0.000000e+00 : f32
    %317 = vector.broadcast %cst_178 : f32 to vector<8x128xf32>
    %318 = arith.maximumf %316, %317 : vector<8x128xf32>
    %319 = vector.broadcast %66 : f32 to vector<8x128xf32>
    %320 = arith.mulf %141, %319 : vector<8x128xf32>
    %321 = vector.broadcast %67 : f32 to vector<8x128xf32>
    %322 = arith.mulf %168, %321 : vector<8x128xf32>
    %323 = arith.addf %320, %322 : vector<8x128xf32>
    %324 = vector.broadcast %68 : f32 to vector<8x128xf32>
    %325 = arith.mulf %195, %324 : vector<8x128xf32>
    %326 = arith.addf %323, %325 : vector<8x128xf32>
    %327 = vector.broadcast %69 : f32 to vector<8x128xf32>
    %328 = arith.mulf %222, %327 : vector<8x128xf32>
    %329 = arith.addf %326, %328 : vector<8x128xf32>
    %330 = vector.broadcast %70 : f32 to vector<8x128xf32>
    %331 = arith.mulf %249, %330 : vector<8x128xf32>
    %332 = arith.addf %329, %331 : vector<8x128xf32>
    %333 = vector.broadcast %71 : f32 to vector<8x128xf32>
    %334 = arith.mulf %276, %333 : vector<8x128xf32>
    %335 = arith.addf %332, %334 : vector<8x128xf32>
    %336 = vector.broadcast %80 : f32 to vector<8x128xf32>
    %337 = arith.addf %335, %336 : vector<8x128xf32>
    %cst_179 = arith.constant 0.000000e+00 : f32
    %338 = vector.broadcast %cst_179 : f32 to vector<8x128xf32>
    %339 = arith.maximumf %337, %338 : vector<8x128xf32>
    %340 = vector.broadcast %72 : f32 to vector<8x128xf32>
    %341 = arith.mulf %141, %340 : vector<8x128xf32>
    %342 = vector.broadcast %73 : f32 to vector<8x128xf32>
    %343 = arith.mulf %168, %342 : vector<8x128xf32>
    %344 = arith.addf %341, %343 : vector<8x128xf32>
    %345 = vector.broadcast %74 : f32 to vector<8x128xf32>
    %346 = arith.mulf %195, %345 : vector<8x128xf32>
    %347 = arith.addf %344, %346 : vector<8x128xf32>
    %348 = vector.broadcast %75 : f32 to vector<8x128xf32>
    %349 = arith.mulf %222, %348 : vector<8x128xf32>
    %350 = arith.addf %347, %349 : vector<8x128xf32>
    %351 = vector.broadcast %76 : f32 to vector<8x128xf32>
    %352 = arith.mulf %249, %351 : vector<8x128xf32>
    %353 = arith.addf %350, %352 : vector<8x128xf32>
    %354 = vector.broadcast %77 : f32 to vector<8x128xf32>
    %355 = arith.mulf %276, %354 : vector<8x128xf32>
    %356 = arith.addf %353, %355 : vector<8x128xf32>
    %357 = vector.broadcast %81 : f32 to vector<8x128xf32>
    %358 = arith.addf %356, %357 : vector<8x128xf32>
    %cst_180 = arith.constant 0.000000e+00 : f32
    %359 = vector.broadcast %cst_180 : f32 to vector<8x128xf32>
    %360 = arith.maximumf %358, %359 : vector<8x128xf32>
    %361 = vector.broadcast %82 : f32 to vector<8x128xf32>
    %362 = arith.mulf %297, %361 : vector<8x128xf32>
    %363 = vector.broadcast %83 : f32 to vector<8x128xf32>
    %364 = arith.mulf %318, %363 : vector<8x128xf32>
    %365 = arith.addf %362, %364 : vector<8x128xf32>
    %366 = vector.broadcast %84 : f32 to vector<8x128xf32>
    %367 = arith.mulf %339, %366 : vector<8x128xf32>
    %368 = arith.addf %365, %367 : vector<8x128xf32>
    %369 = vector.broadcast %85 : f32 to vector<8x128xf32>
    %370 = arith.mulf %360, %369 : vector<8x128xf32>
    %371 = arith.addf %368, %370 : vector<8x128xf32>
    %372 = vector.broadcast %86 : f32 to vector<8x128xf32>
    %373 = arith.addf %371, %372 : vector<8x128xf32>
    %cst_181 = arith.constant 5.000000e-01 : f32
    %374 = vector.broadcast %cst_181 : f32 to vector<8x128xf32>
    %375 = arith.mulf %374, %373 : vector<8x128xf32>
    %376 = math.tanh %375 : vector<8x128xf32>
    %cst_182 = arith.constant 5.000000e-01 : f32
    %377 = vector.broadcast %cst_182 : f32 to vector<8x128xf32>
    %378 = arith.mulf %377, %376 : vector<8x128xf32>
    %cst_183 = arith.constant 5.000000e-01 : f32
    %379 = vector.broadcast %cst_183 : f32 to vector<8x128xf32>
    %380 = arith.addf %378, %379 : vector<8x128xf32>
    %381 = arith.index_cast %90 : i32 to index
    %c0_184 = arith.constant 0 : index
    %382 = vector.load %arg8[%381, %c0_184] : memref<8x128xf32, #tpu.memory_space<vmem>>, vector<8x128xf32>
    tpu.vector_store %arg8[%381, %c0_184], %380 {strides = array<i32>} : memref<8x128xf32, #tpu.memory_space<vmem>>, vector<8x128xf32>,
    %c1_i32_185 = arith.constant 1 : i32
    return
  }
  func.func @transform_0(%arg0: i32) -> (i32, i32) {
    %c0_i32 = arith.constant 0 : i32
    %c0_i32_0 = arith.constant 0 : i32
    %c0_i32_1 = arith.constant 0 : i32
    return %c0_i32, %c0_i32_0 : i32, i32
  }
  func.func @transform_1(%arg0: i32) -> i32 {
    %c0_i32 = arith.constant 0 : i32
    %c0_i32_0 = arith.constant 0 : i32
    return %c0_i32 : i32
  }
  func.func @transform_2(%arg0: i32) -> (i32, i32) {
    %c0_i32 = arith.constant 0 : i32
    %c0_i32_0 = arith.constant 0 : i32
    %c0_i32_1 = arith.constant 0 : i32
    return %c0_i32, %c0_i32_0 : i32, i32
  }
  func.func @transform_3(%arg0: i32) -> i32 {
    %c0_i32 = arith.constant 0 : i32
    %c0_i32_0 = arith.constant 0 : i32
    return %c0_i32 : i32
  }
  func.func @transform_4(%arg0: i32) -> (i32, i32) {
    %c0_i32 = arith.constant 0 : i32
    %c0_i32_0 = arith.constant 0 : i32
    %c0_i32_1 = arith.constant 0 : i32
    return %c0_i32, %c0_i32_0 : i32, i32
  }
  func.func @transform_5(%arg0: i32) -> i32 {
    %c0_i32 = arith.constant 0 : i32
    %c0_i32_0 = arith.constant 0 : i32
    return %c0_i32 : i32
  }
  func.func @transform_6(%arg0: i32) -> (i32, i32, i32) {
    %c0_i32 = arith.constant 0 : i32
    %c0_i32_0 = arith.constant 0 : i32
    %c0_i32_1 = arith.constant 0 : i32
    return %c0_i32, %arg0, %c0_i32_0 : i32, i32, i32
  }
  func.func @transform_7(%arg0: i32) -> (i32, i32) {
    %c0_i32 = arith.constant 0 : i32
    %c0_i32_0 = arith.constant 0 : i32
    return %arg0, %c0_i32 : i32, i32
  }
}

</mosaic_0001>

<bundles_post_ra>
// kernel: tpu_custom_call.1
= control target key start
LH: loop header
LB: loop body
LE: loop exit
PB: predicated region body
PF: predicated region fallthrough
CT: control target
= control target key end

     0   :  { %13 = vsyncpa [#allocation6], 0  ;;  %s1102_s0 = inlined_call_operand.hbm [shape: f32[6,8], index: 0, kind: input, shape index: {}]   ;;  %s1103_s1 = inlined_call_operand.vmem [shape: f32[6], index: 1, kind: input, shape index: {}]   ;;  %s1104_s2 = inlined_call_operand.hbm [shape: f32[4,6], index: 2, kind: input, shape index: {}]   ;;  %s1105_s3 = inlined_call_operand.vmem [shape: f32[4], index: 3, kind: input, shape index: {}]   ;;  %s1106_s4 = inlined_call_operand.vmem [shape: f32[1,4], index: 4, kind: input, shape index: {}]   ;;  %s1107_s5 = inlined_call_operand.<no memory space> [shape: f32[1], index: 5, kind: input, shape index: {}]   ;;  %s1108_s6 = inlined_call_operand.hbm [shape: f32[8,8,128], index: 6, kind: input, shape index: {}]   ;;  %s1109_s7 = inlined_call_operand.hbm [shape: f32[8,128], index: 7, kind: output, shape index: {}]  }
   0x1   :  { %14 = vsyncpa [#allocation7], 0 }
   0x2   :  { %15 = vsyncpa [#allocation10], 0 }
   0x3   :  { %16 = vsyncpa [#allocation12], 0 }
   0x4   :  { %17 = vsyncpa [#allocation4], 0  ;;  %s51_s26 = sshll.u32 %s1105_s3, 4  ;;  %s52_s26 = int_to_ptr.vmem [resolvable:$true] %s51_s26 }
   0x5   :  { %18 = vsyncpa [#allocation5], 0  ;;  %s24_s29 = sshll.u32 %s1102_s0, 4  ;;  %s707_s30 = smov [#allocation11]   ;;  %s25_s29 = int_to_ptr.hbm [resolvable:$true] %s24_s29 }
   0x6   :  { %54 = dma.vmem_to_smem %s52_s26, 16, %s707_s30, [#allocation12]  }
   0x7   :  { %s708_s8 = smov [#allocation3]   ;;  %s33_s11 = sshll.u32 %s1103_s1, 4  ;;  %s34_s11 = int_to_ptr.vmem [resolvable:$true] %s33_s11 }
   0x8   :  { %27 = dma.hbm_to_smem %s25_s29, 128, %s708_s8, [#allocation6]  }
   0x9   :  { %s42_s3 = sshll.u32 %s1104_s2, 4  ;;  %s709_s14 = smov [#allocation8]   ;;  %s43_s3 = int_to_ptr.hbm [resolvable:$true] %s42_s3 }
   0xa   :  { %36 = dma.vmem_to_smem %s34_s11, 16, %s709_s14, [#allocation7]  }
   0xb   :  { %s710_s15 = smov [#allocation9]   ;;  %s60_s17 = sshll.u32 %s1106_s4, 4  ;;  %s61_s17 = int_to_ptr.vmem [resolvable:$true] %s60_s17 }
   0xc   :  { %45 = dma.hbm_to_smem %s43_s3, 64, %s710_s15, [#allocation10]  }
   0xd   :  { %s70_s20 = sshll.u32 %s1108_s6, 4  ;;  %s711_s1 = smov [#allocation13]   ;;  %s71_s20 = int_to_ptr.hbm [resolvable:$true] %s70_s20 }
   0xe   :  { %63 = dma.vmem_to_smem %s61_s17, 16, %s711_s1, [#allocation12]  }
   0xf   :  { %s712_s21 = smov [#allocation14]   ;;  %s713_s2 = smov 128  }
  0x10   :  { %s72_s22 = sshll.u32 %s712_s21, 4  ;;  %s714_s23 = smov 8   ;;  %s73_s22 = int_to_ptr.vmem [resolvable:$true] %s72_s22 }
  0x11   :  { %78 = dma.hbm_to_vmem [thread:$0]  %s71_s20, 1024, %s73_s22, [#allocation4], %s713_s2, %s713_s2, %s714_s23  }
  0x12   :  { %695 = dma.done.wait [#allocation6], 128  }
  0x13   :  { %696 = vsyncadd [#allocation6], 4294967168 }
  0x14   :  { %697 = dma.done.wait [#allocation7], 16  }
  0x15   :  { %698 = vsyncadd [#allocation7], 4294967280 }
  0x16   :  { %699 = dma.done.wait [#allocation10], 64  }
  0x17   :  { %700 = vsyncadd [#allocation10], 4294967232 }
  0x18   :  { %701 = dma.done.wait [#allocation12], 32  }
  0x19   :  { %702 = vsyncadd [#allocation12], 4294967264 }
  0x1a   :  { %703 = dma.done.wait [#allocation4], 1024  }
  0x1b   :  { %704 = vsyncadd [#allocation4], 4294966272 }
  0x1c   :  { %103 = sfence }
  0x1d   :  { %s774_s4 = sld [smem:[#allocation3]]  ;;  %v818_v0 = vld [vmem:[#allocation14] sm:$0xff]  ;;  %v820_v1 = vld [vmem:[#allocation14 + $0x8] sm:$0xff]  ;;  %v832_v10 = vld [vmem:[#allocation14 + $0x10] sm:$0xff] }
  0x1e   :  { %s776_s6 = sld [smem:[#allocation3 + $0x1]]  ;;  %v844_v19 = vld [vmem:[#allocation14 + $0x18] sm:$0xff]  ;;  %v856_v28 = vld [vmem:[#allocation14 + $0x20] sm:$0xff]  ;;  %v867_v37 = vld [vmem:[#allocation14 + $0x28] sm:$0xff] }
  0x1f   :  { %s778_s24 = sld [smem:[#allocation3 + $0x2]]  ;;  %v879_v46 = vld [vmem:[#allocation14 + $0x30] sm:$0xff]  ;;  %v890_v55 = vld [vmem:[#allocation14 + $0x38] sm:$0xff] }
  0x20   :  { %s780_s25 = sld [smem:[#allocation3 + $0x3]] }
  0x21   :  { %s782_s26 = sld [smem:[#allocation3 + $0x4]] }
  0x22   :  { %s784_s27 = sld [smem:[#allocation3 + $0x5]] }
  0x23   :  { %s786_s28 = sld [smem:[#allocation3 + $0x6]]  ;;  %v213_v2 = vstv %s774_s4 }
  0x24   :  { %s788_s29 = sld [smem:[#allocation3 + $0x7]]  ;;  %v215_v3 = vstv %s776_s6  ;;  %v214_v6 = vmul.f32 %v213_v2, %v818_v0 }
  0x25   :  { %s502_s30 = sld [smem:[#allocation3 + $0x80]]  ;;  %v216_v7 = vmul.f32 %v215_v3, %v820_v1  ;;  %v218_v11 = vstv %s778_s24 }
  0x26   :  { %s503_s8 = sld [smem:[#allocation3 + $0x81]]  ;;  %v219_v16 = vmul.f32 %v218_v11, %v832_v10  ;;  %v221_v20 = vstv %s780_s25 }
  0x27   :  { %s790_s9 = sld [smem:[#allocation3 + $0x82]]  ;;  %v217_v15 = vadd.f32 %v216_v7, %v214_v6  ;;  %v222_v25 = vmul.f32 %v221_v20, %v844_v19  ;;  %v224_v29 = vstv %s782_s26 }
  0x28   :  { %s792_s10 = sld [smem:[#allocation3 + $0x83]]  ;;  %v225_v34 = vmul.f32 %v224_v29, %v856_v28  ;;  %v227_v38 = vstv %s784_s27 }
  0x29   :  { %s794_s11 = sld [smem:[#allocation3 + $0x84]]  ;;  %v220_v24 = vadd.f32 %v219_v16, %v217_v15  ;;  %v228_v43 = vmul.f32 %v227_v38, %v867_v37  ;;  %v230_v47 = vstv %s786_s28 }
  0x2a   :  { %s796_s12 = sld [smem:[#allocation3 + $0x85]]  ;;  %v231_v52 = vmul.f32 %v230_v47, %v879_v46  ;;  %v233_v56 = vstv %s788_s29 }
  0x2b   :  { %s798_s13 = sld [smem:[#allocation3 + $0x86]]  ;;  %v239_v4 = vstv %s502_s30  ;;  %v223_v33 = vadd.f32 %v222_v25, %v220_v24  ;;  %v234_v2 = vmul.f32 %v233_v56, %v890_v55 }
  0x2c   :  { %s800_s3 = sld [smem:[#allocation3 + $0x87]]  ;;  %v241_v5 = vstv %s503_s8  ;;  %v240_v8 = vmul.f32 %v239_v4, %v818_v0 }
  0x2d   :  { %s802_s14 = sld [smem:[#allocation3 + $0x100]]  ;;  %v242_v9 = vmul.f32 %v241_v5, %v820_v1  ;;  %v244_v12 = vstv %s790_s9  ;;  %v226_v42 = vadd.f32 %v225_v34, %v223_v33 }
  0x2e   :  { %s804_s15 = sld [smem:[#allocation3 + $0x101]]  ;;  %v245_v18 = vmul.f32 %v244_v12, %v832_v10  ;;  %v247_v21 = vstv %s792_s10 }
  0x2f   :  { %s806_s0 = sld [smem:[#allocation3 + $0x102]]  ;;  %v243_v17 = vadd.f32 %v242_v9, %v240_v8  ;;  %v248_v27 = vmul.f32 %v247_v21, %v844_v19  ;;  %v250_v30 = vstv %s794_s11  ;;  %v229_v51 = vadd.f32 %v228_v43, %v226_v42 }
  0x30   :  { %s808_s16 = sld [smem:[#allocation3 + $0x103]]  ;;  %v251_v36 = vmul.f32 %v250_v30, %v856_v28  ;;  %v253_v39 = vstv %s796_s12 }
  0x31   :  { %s810_s17 = sld [smem:[#allocation3 + $0x104]]  ;;  %v246_v26 = vadd.f32 %v245_v18, %v243_v17  ;;  %v254_v45 = vmul.f32 %v253_v39, %v867_v37  ;;  %v256_v48 = vstv %s798_s13  ;;  %v232_v60 = vadd.f32 %v231_v52, %v229_v51 }
  0x32   :  { %s812_s18 = sld [smem:[#allocation3 + $0x105]]  ;;  %v257_v54 = vmul.f32 %v256_v48, %v879_v46  ;;  %v259_v59 = vstv %s800_s3 }
  0x33   :  { %s814_s19 = sld [smem:[#allocation3 + $0x106]]  ;;  %v265_v13 = vstv %s802_s14  ;;  %v249_v35 = vadd.f32 %v248_v27, %v246_v26  ;;  %v260_v15 = vmul.f32 %v259_v59, %v890_v55  ;;  %v927_v20 = vadd.f32 %v234_v2, %v232_v60 }
  0x34   :  { %s816_s20 = sld [smem:[#allocation3 + $0x107]]  ;;  %v267_v14 = vstv %s804_s15  ;;  %v266_v22 = vmul.f32 %v265_v13, %v818_v0 }
  0x35   :  { %s824_s1 = sld [smem:[#allocation3 + $0x180]]  ;;  %v268_v23 = vmul.f32 %v267_v14, %v820_v1  ;;  %v270_v32 = vstv %s806_s0  ;;  %v252_v44 = vadd.f32 %v251_v36, %v249_v35 }
  0x36   :  { %s830_s21 = sld [smem:[#allocation3 + $0x181]]  ;;  %v271_v40 = vmul.f32 %v270_v32, %v832_v10  ;;  %v273_v41 = vstv %s808_s16 }
  0x37   :  { %s838_s22 = sld [smem:[#allocation3 + $0x182]]  ;;  %v269_v31 = vadd.f32 %v268_v23, %v266_v22  ;;  %v274_v50 = vmul.f32 %v273_v41, %v844_v19  ;;  %v255_v53 = vadd.f32 %v254_v45, %v252_v44  ;;  %v276_v58 = vstv %s810_s17 }
  0x38   :  { %s842_s2 = sld [smem:[#allocation3 + $0x183]]  ;;  %v277_v61 = vmul.f32 %v276_v58, %v856_v28  ;;  %v279_v62 = vstv %s812_s18 }
  0x39   :  { %s850_s23 = sld [smem:[#allocation3 + $0x184]]  ;;  %v272_v49 = vadd.f32 %v271_v40, %v269_v31  ;;  %v282_v63 = vstv %s814_s19  ;;  %v905_v3 = vadd.f32 %v257_v54, %v255_v53  ;;  %v280_v4 = vmul.f32 %v279_v62, %v867_v37 }
  0x3a   :  { %s854_s4 = sld [smem:[#allocation3 + $0x185]]  ;;  %v285_v5 = vstv %s816_s20  ;;  %v283_v7 = vmul.f32 %v282_v63, %v879_v46 }
  0x3b   :  { %s861_s6 = sld [smem:[#allocation3 + $0x186]]  ;;  %v275_v57 = vadd.f32 %v274_v50, %v272_v49  ;;  %v291_v8 = vstv %s824_s1  ;;  %v286_v25 = vmul.f32 %v285_v5, %v890_v55  ;;  %v261_v2 = vadd.f32 %v260_v15, %v905_v3 }
  0x3c   :  { %s865_s24 = sld [smem:[#allocation3 + $0x187]]  ;;  %v293_v9 = vstv %s830_s21  ;;  %v292_v11 = vmul.f32 %v291_v8, %v818_v0 }
  0x3d   :  { %s873_s25 = sld [smem:[#allocation3 + $0x200]]  ;;  %v278_v6 = vadd.f32 %v277_v61, %v275_v57  ;;  %v294_v12 = vmul.f32 %v293_v9, %v820_v1  ;;  %v296_v13 = vstv %s838_s22 }
  0x3e   :  { %s877_s26 = sld [smem:[#allocation3 + $0x201]]  ;;  %v299_v14 = vstv %s842_s2  ;;  %v297_v17 = vmul.f32 %v296_v13, %v832_v10 }
  0x3f   :  { %s884_s27 = sld [smem:[#allocation3 + $0x202]]  ;;  %v281_v16 = vadd.f32 %v280_v4, %v278_v6  ;;  %v302_v18 = vstv %s850_s23  ;;  %v295_v21 = vadd.f32 %v294_v12, %v292_v11  ;;  %v300_v22 = vmul.f32 %v299_v14, %v844_v19 }
  0x40   :  { %s888_s30 = sld [smem:[#allocation3 + $0x203]]  ;;  %v305_v23 = vstv %s854_s4  ;;  %v303_v26 = vmul.f32 %v302_v18, %v856_v28 }
  0x41   :  { %s894_s28 = sld [smem:[#allocation3 + $0x204]]  ;;  %v284_v24 = vadd.f32 %v283_v7, %v281_v16  ;;  %v308_v27 = vstv %s861_s6  ;;  %v298_v29 = vadd.f32 %v297_v17, %v295_v21  ;;  %v306_v30 = vmul.f32 %v305_v23, %v867_v37 }
  0x42   :  { %s897_s8 = sld [smem:[#allocation3 + $0x205]]  ;;  %v311_v33 = vstv %s865_s24  ;;  %v309_v42 = vmul.f32 %v308_v27, %v879_v46 }
  0x43   :  { %s902_s9 = sld [smem:[#allocation3 + $0x206]]  ;;  %v317_v31 = vstv %s873_s25  ;;  %v301_v38 = vadd.f32 %v300_v22, %v298_v29  ;;  %v312_v48 = vmul.f32 %v311_v33, %v890_v55  ;;  %v287_v4 = vadd.f32 %v286_v25, %v284_v24 }
  0x44   :  { %s909_s29 = sld [smem:[#allocation3 + $0x207]]  ;;  %v319_v32 = vstv %s877_s26  ;;  %v318_v34 = vmul.f32 %v317_v31, %v818_v0 }
  0x45   :  { %s914_s10 = sld [smem:[#allocation3 + $0x280]]  ;;  %v320_v35 = vmul.f32 %v319_v32, %v820_v1  ;;  %v322_v36 = vstv %s884_s27  ;;  %v304_v47 = vadd.f32 %v303_v26, %v301_v38 }
  0x46   :  { %s920_s11 = sld [smem:[#allocation3 + $0x281]]  ;;  %v323_v39 = vmul.f32 %v322_v36, %v832_v10  ;;  %v325_v40 = vstv %s888_s30 }
  0x47   :  { %s925_s12 = sld [smem:[#allocation3 + $0x282]]  ;;  %v328_v41 = vstv %s894_s28  ;;  %v321_v43 = vadd.f32 %v320_v35, %v318_v34  ;;  %v326_v44 = vmul.f32 %v325_v40, %v844_v19  ;;  %v307_v56 = vadd.f32 %v306_v30, %v304_v47 }
  0x48   :  { %s931_s13 = sld [smem:[#allocation3 + $0x283]]  ;;  %v331_v45 = vstv %s897_s8  ;;  %v329_v49 = vmul.f32 %v328_v41, %v856_v28 }
  0x49   :  { %s936_s3 = sld [smem:[#allocation3 + $0x284]]  ;;  %v332_v50 = vmul.f32 %v331_v45, %v867_v37  ;;  %v324_v51 = vadd.f32 %v323_v39, %v321_v43  ;;  %v334_v52 = vstv %s902_s9 }
  0x4a   :  { %s941_s14 = sld [smem:[#allocation3 + $0x285]]  ;;  %v337_v53 = vstv %s909_s29  ;;  %v335_v5 = vmul.f32 %v334_v52, %v879_v46 }
  0x4b   :  { %s947_s15 = sld [smem:[#allocation3 + $0x286]]  ;;  %v343_v54 = vstv %s914_s10  ;;  %v327_v60 = vadd.f32 %v326_v44, %v324_v51  ;;  %v338_v7 = vmul.f32 %v337_v53, %v890_v55 }
  0x4c   :  { %s952_s0 = sld [smem:[#allocation3 + $0x287]]  ;;  %v344_v57 = vmul.f32 %v343_v54, %v818_v0  ;;  %v345_v58 = vstv %s920_s11  ;;  %v310_v0 = vadd.f32 %v309_v42, %v307_v56 }
  0x4d   :  { %s957_s16 = sld [smem:[#allocation8]]  ;;  %v348_v59 = vstv %s925_s12  ;;  %v346_v61 = vmul.f32 %v345_v58, %v820_v1  ;;  %v330_v6 = vadd.f32 %v329_v49, %v327_v60 }
  0x4e   :  { %s962_s17 = sld [smem:[#allocation8 + $0x1]]  ;;  %v349_v62 = vmul.f32 %v348_v59, %v832_v10  ;;  %v351_v63 = vstv %s931_s13  ;;  %v313_v9 = vadd.f32 %v312_v48, %v310_v0 }
  0x4f   :  { %s967_s18 = sld [smem:[#allocation8 + $0x2]]  ;;  %v347_v1 = vadd.f32 %v346_v61, %v344_v57  ;;  %v354_v10 = vstv %s936_s3  ;;  %v352_v3 = vmul.f32 %v351_v63, %v844_v19  ;;  %v333_v14 = vadd.f32 %v332_v50, %v330_v6 }
  0x50   :  { %s972_s19 = sld [smem:[#allocation8 + $0x3]]  ;;  %v357_v11 = vstv %s941_s14  ;;  %v355_v18 = vmul.f32 %v354_v10, %v856_v28 }
  0x51   :  { %s977_s20 = sld [smem:[#allocation8 + $0x4]]  ;;  %v350_v15 = vadd.f32 %v349_v62, %v347_v1  ;;  %v360_v21 = vstv %s947_s15  ;;  %v358_v26 = vmul.f32 %v357_v11, %v867_v37 }
  0x52   :  { %s981_s1 = sld [smem:[#allocation8 + $0x5]]  ;;  %v363_v27 = vstv %s952_s0  ;;  %v361_v33 = vmul.f32 %v360_v21, %v879_v46 }
  0x53   :  { %s985_s21 = sld [smem:[#allocation9]]  ;;  %v236_v8 = vstv %s957_s16  ;;  %v353_v25 = vadd.f32 %v352_v3, %v350_v15  ;;  %v364_v35 = vmul.f32 %v363_v27, %v890_v55 }
  0x54   :  { %s990_s22 = sld [smem:[#allocation9 + $0x1]]  ;;  %v237_v12 = vadd.f32 %v236_v8, %v927_v20  ;;  %v262_v13 = vstv %s962_s17  ;;  %v336_v20 = vadd.f32 %v335_v5, %v333_v14 }
  0x55   :  { %s994_s2 = sld [smem:[#allocation9 + $0x2]]  ;;  %v263_v16 = vadd.f32 %v262_v13, %v261_v2  ;;  %v288_v17 = vstv %s967_s18  ;;  %v356_v32 = vadd.f32 %v355_v18, %v353_v25 }
  0x56   :  { %s999_s23 = sld [smem:[#allocation9 + $0x3]]  ;;  %v1001_v19 = vmax.f32 %v237_v12, 0.0  ;;  %v289_v22 = vadd.f32 %v288_v17, %v287_v4  ;;  %v314_v23 = vstv %s972_s19  ;;  %v339_v30 = vadd.f32 %v338_v7, %v336_v20 }
  0x57   :  { %s1004_s4 = sld [smem:[#allocation9 + $0x4]]  ;;  %v1006_v24 = vmax.f32 %v263_v16, 0.0  ;;  %v315_v29 = vadd.f32 %v314_v23, %v313_v9  ;;  %v340_v31 = vstv %s977_s20  ;;  %v359_v39 = vadd.f32 %v358_v26, %v356_v32 }
  0x58   :  { %s1010_s6 = sld [smem:[#allocation9 + $0x5]]  ;;  %v1012_v28 = vmax.f32 %v289_v22, 0.0  ;;  %v341_v38 = vadd.f32 %v340_v31, %v339_v30  ;;  %v366_v45 = vstv %s981_s1 }
  0x59   :  { %s552_s24 = sld [smem:[#allocation9 + $0x80]]  ;;  %v369_v34 = vstv %s985_s21  ;;  %v1024_v42 = vmax.f32 %v315_v29, 0.0  ;;  %v362_v43 = vadd.f32 %v361_v33, %v359_v39 }
  0x5a   :  { %s1017_s25 = sld [smem:[#allocation9 + $0x81]]  ;;  %v370_v37 = vmul.f32 %v369_v34, %v1001_v19  ;;  %v371_v36 = vstv %s990_s22  ;;  %v1035_v47 = vmax.f32 %v341_v38, 0.0 }
  0x5b   :  { %s554_s26 = sld [smem:[#allocation9 + $0x82]]  ;;  %v372_v40 = vmul.f32 %v371_v36, %v1006_v24  ;;  %v374_v41 = vstv %s994_s2  ;;  %v365_v48 = vadd.f32 %v364_v35, %v362_v43 }
  0x5c   :  { %s555_s27 = sld [smem:[#allocation9 + $0x83]]  ;;  %v375_v46 = vmul.f32 %v374_v41, %v1012_v28  ;;  %v377_v44 = vstv %s999_s23 }
  0x5d   :  { %s1027_s30 = sld [smem:[#allocation9 + $0x84]]  ;;  %v373_v55 = vadd.f32 %v372_v40, %v370_v37  ;;  %v378_v51 = vmul.f32 %v377_v44, %v1024_v42  ;;  %v367_v54 = vadd.f32 %v366_v45, %v365_v48  ;;  %v380_v56 = vstv %s1004_s4 }
  0x5e   :  { %s1030_s28 = sld [smem:[#allocation9 + $0x85]]  ;;  %v381_v2 = vmul.f32 %v380_v56, %v1035_v47  ;;  %v383_v6 = vstv %s1010_s6  ;;  %s715_s6 = smov [#allocation15]  }
  0x5f   :  { %s1033_s8 = sld [smem:[#allocation9 + $0x100]]  ;;  %v389_v49 = vstv %s552_s24  ;;  %v376_v50 = vadd.f32 %v375_v46, %v373_v55  ;;  %v368_v0 = vmax.f32 %v367_v54, 0.0  ;;  %s472_s24 = sshll.u32 %s715_s6, 4  ;;  %s473_s24 = int_to_ptr.vmem [resolvable:$true] %s472_s24 }
  0x60   :  { %s1037_s9 = sld [smem:[#allocation9 + $0x101]]  ;;  %v390_v52 = vmul.f32 %v389_v49, %v1001_v19  ;;  %v391_v53 = vstv %s1017_s25 }
  0x61   :  { %s1042_s29 = sld [smem:[#allocation9 + $0x102]]  ;;  %v392_v57 = vmul.f32 %v391_v53, %v1006_v24  ;;  %v394_v58 = vstv %s554_s26  ;;  %v379_v63 = vadd.f32 %v378_v51, %v376_v50  ;;  %v384_v15 = vmul.f32 %v383_v6, %v368_v0 }
  0x62   :  { %s1046_s10 = sld [smem:[#allocation9 + $0x103]]  ;;  %v395_v59 = vmul.f32 %v394_v58, %v1012_v28  ;;  %v397_v60 = vstv %s555_s27  ;;  %s474_s27 = sshll.u32 %s1109_s7, 4  ;;  %s475_s27 = int_to_ptr.hbm [resolvable:$true] %s474_s27 }
  0x63   :  { %s1049_s11 = sld [smem:[#allocation9 + $0x104]]  ;;  %v393_v61 = vadd.f32 %v392_v57, %v390_v52  ;;  %v398_v62 = vmul.f32 %v397_v60, %v1024_v42  ;;  %v400_v4 = vstv %s1027_s30  ;;  %v382_v12 = vadd.f32 %v381_v2, %v379_v63 }
  0x64   :  { %s1052_s12 = sld [smem:[#allocation9 + $0x105]]  ;;  %v401_v7 = vmul.f32 %v400_v4, %v1035_v47  ;;  %v403_v9 = vstv %s1030_s28 }
  0x65   :  { %s1056_s13 = sld [smem:[#allocation9 + $0x180]]  ;;  %v396_v5 = vadd.f32 %v395_v59, %v393_v61  ;;  %v409_v1 = vstv %s1033_s8  ;;  %v404_v22 = vmul.f32 %v403_v9, %v368_v0  ;;  %v385_v35 = vadd.f32 %v384_v15, %v382_v12 }
  0x66   :  { %s1058_s3 = sld [smem:[#allocation9 + $0x181]]  ;;  %v411_v10 = vstv %s1037_s9  ;;  %v410_v3 = vmul.f32 %v409_v1, %v1001_v19 }
  0x67   :  { %s1064_s14 = sld [smem:[#allocation9 + $0x182]]  ;;  %v399_v8 = vadd.f32 %v398_v62, %v396_v5  ;;  %v412_v11 = vmul.f32 %v411_v10, %v1006_v24  ;;  %v414_v13 = vstv %s1042_s29 }
  0x68   :  { %s1069_s15 = sld [smem:[#allocation9 + $0x183]]  ;;  %v417_v14 = vstv %s1046_s10  ;;  %v415_v17 = vmul.f32 %v414_v13, %v1012_v28 }
  0x69   :  { %s1073_s0 = sld [smem:[#allocation9 + $0x184]]  ;;  %v413_v16 = vadd.f32 %v412_v11, %v410_v3  ;;  %v418_v18 = vmul.f32 %v417_v14, %v1024_v42  ;;  %v402_v21 = vadd.f32 %v401_v7, %v399_v8  ;;  %v420_v23 = vstv %s1049_s11 }
  0x6a   :  { %s1077_s16 = sld [smem:[#allocation9 + $0x185]]  ;;  %v423_v20 = vstv %s1052_s12  ;;  %v421_v26 = vmul.f32 %v420_v23, %v1035_v47 }
  0x6b   :  { %s182_s17 = sld [smem:[#allocation11]]  ;;  %v416_v25 = vadd.f32 %v415_v17, %v413_v16  ;;  %v424_v27 = vmul.f32 %v423_v20, %v368_v0  ;;  %v429_v29 = vstv %s1056_s13  ;;  %v405_v37 = vadd.f32 %v404_v22, %v402_v21 }
  0x6c   :  { %s570_s18 = sld [smem:[#allocation11 + $0x1]]  ;;  %v431_v30 = vstv %s1058_s3  ;;  %v430_v32 = vmul.f32 %v429_v29, %v1001_v19 }
  0x6d   :  { %s571_s19 = sld [smem:[#allocation11 + $0x2]]  ;;  %v419_v31 = vadd.f32 %v418_v18, %v416_v25  ;;  %v432_v33 = vmul.f32 %v431_v30, %v1006_v24  ;;  %v434_v34 = vstv %s1064_s14 }
  0x6e   :  { %s1087_s20 = sld [smem:[#allocation11 + $0x3]]  ;;  %v435_v36 = vmul.f32 %v434_v34, %v1012_v28  ;;  %v437_v38 = vstv %s1069_s15 }
  0x6f   :  { %s186_s1 = sld [smem:[#allocation13]]  ;;  %v422_v39 = vadd.f32 %v421_v26, %v419_v31  ;;  %v433_v40 = vadd.f32 %v432_v33, %v430_v32  ;;  %v438_v41 = vmul.f32 %v437_v38, %v1024_v42  ;;  %v440_v46 = vstv %s1073_s0 }
  0x70   :  { %s573_s21 = sld [smem:[#allocation13 + $0x1]]  ;;  %v443_v43 = vstv %s1077_s16  ;;  %v441_v44 = vmul.f32 %v440_v46, %v1035_v47 }
  0x71   :  { %s574_s22 = sld [smem:[#allocation13 + $0x2]]  ;;  %v386_v19 = vstv %s182_s17  ;;  %v425_v55 = vadd.f32 %v424_v27, %v422_v39  ;;  %v436_v24 = vadd.f32 %v435_v36, %v433_v40  ;;  %v444_v51 = vmul.f32 %v443_v43, %v368_v0 }
  0x72   :  { %s575_s2 = sld [smem:[#allocation13 + $0x3]]  ;;  %v387_v45 = vadd.f32 %v386_v19, %v385_v35  ;;  %v406_v48 = vstv %s570_s18  ;;  %v460_v0 = vstv %s1107_s5 }
  0x73   :  { %v407_v28 = vadd.f32 %v406_v48, %v405_v37  ;;  %v426_v49 = vstv %s571_s19  ;;  %v439_v50 = vadd.f32 %v438_v41, %v436_v24 }
  0x74   :  { %v388_v52 = vmax.f32 %v387_v45, 0.0  ;;  %v427_v53 = vadd.f32 %v426_v49, %v425_v55  ;;  %v446_v58 = vstv %s1087_s20 }
  0x75   :  { %v408_v42 = vmax.f32 %v407_v28, 0.0  ;;  %v442_v54 = vadd.f32 %v441_v44, %v439_v50  ;;  %v449_v56 = vstv %s186_s1 }
  0x76   :  { %v428_v57 = vmax.f32 %v427_v53, 0.0  ;;  %v450_v59 = vmul.f32 %v449_v56, %v388_v52  ;;  %v451_v60 = vstv %s573_s21 }
  0x77   :  { %v445_v61 = vadd.f32 %v444_v51, %v442_v54  ;;  %v452_v62 = vmul.f32 %v451_v60, %v408_v42  ;;  %v454_v63 = vstv %s574_s22 }
  0x78   :  { %v455_v47 = vmul.f32 %v454_v63, %v428_v57  ;;  %v457_v5 = vstv %s575_s2 }
  0x79   :  { %v447_v2 = vadd.f32 %v446_v58, %v445_v61  ;;  %v453_v4 = vadd.f32 %v452_v62, %v450_v59 }
  0x7b   :  { %v448_v6 = vmax.f32 %v447_v2, 0.0  ;;  %v456_v7 = vadd.f32 %v455_v47, %v453_v4 }
  0x7d   :  { %v458_v1 = vmul.f32 %v457_v5, %v448_v6 }
  0x7f   :  { %v459_v10 = vadd.f32 %v458_v1, %v456_v7 }
  0x81   :  { %v461_v8 = vadd.f32 %v460_v0, %v459_v10 }
  0x83   :  { %v462_v9 = vmul.f32 0.5, %v461_v8 }
  0x85   :  { %585 = vtanh.f32 %v462_v9 }
  0x8b   :  { %v586_v3 = vpop.eup %585 }
  0x8c   :  { %v464_v11 = vmul.f32 0.5, %v586_v3 }
  0x8e   :  { %v465_v12 = vadd.f32 0.5, %v464_v11 }
  0x90   :  { %466 = vst [vmem:[#allocation15] sm:$0xff] %v465_v12 }
  0x91   :  { %477 = dma.vmem_to_hbm [thread:$0]  %s473_s24, 128, %s475_s27, [#allocation5]  }
  0x92   :  { %705 = dma.done.wait [#allocation5], 128  }
  0x93   :  { %706 = vsyncadd [#allocation5], 4294967168 }
  0x94   :  { %482 = vsyncpa [#allocation4], 1 }
  0x95   :  { %483 = vsyncpa [#allocation5], 1 }
  0x96   :  { %484 = vsyncpa [#allocation6], 1 }
  0x97   :  { %485 = vsyncpa [#allocation10], 1 }
  0x98   :  { %486 = vsyncpa [#allocation7], 1 }
  0x99   :  { %487 = vsyncpa [#allocation12], 1 }

</bundles_post_ra>
